<compile_context>
chip_gen: v7x
topology: tpu7x:2x2x1
jax: 0.10.0
libtpu: 0.0.40
codegen_flags: <defaults>
</compile_context>

<pallas_src>
import functools

import numpy as np
import jax
import jax.numpy as jnp
from jax.experimental import pallas as pl
from jax.experimental.pallas import tpu as pltpu

_EPS = 1e-5


def _round_up(v, m):
    return ((v + m - 1) // m) * m


# ----------------------------------------------------------------------------
# Fused Pallas kernel: B samples per grid step
# ----------------------------------------------------------------------------
def _mfa_kernel(x_ref, wstk_ref, wc_ref, wda_ref, bd_ref, o_ref, *,
                pp, ip, qb, cin, B, TV):
    """MFA forward for a block of B samples.

    x_ref   : (Cin, B*TV)          bf16  lane-flattened activations (sample-major lanes)
    wstk_ref: (pp+ip+qb+cp, Cin)   bf16  stacked [Wv ; Wk ; Wq ; BN-folded Wd_x], zero padded
    wc_ref  : (pp, ip)             f32   conv_c, zero padded
    wda_ref : (Cin, pp)            bf16  BN-folded conv_down[:, :planes], zero padded
    bd_ref  : (Cin, 1)             f32   folded BN shift
    o_ref   : (Cin, B*TV)          bf16
    """
    x = x_ref[...]

    # All four input-side 1x1 convolutions as ONE MXU matmul (f32 accumulation).
    vkq = jnp.dot(wstk_ref[...], x, preferred_element_type=jnp.float32)   # (rows, B*TV)

    value = vkq[0:pp].reshape(pp, B, TV)                  # conv_v(x); padded rows are 0
    key = vkq[pp:pp + ip].reshape(ip, B, TV)              # conv_k(x); padded rows are 0
    q = vkq[pp + ip:pp + ip + 1].reshape(B, TV)           # conv_q(x), one row per sample
    resid = vkq[pp + ip + qb:pp + ip + qb + cin]          # folded conv_down[:, P:] @ x

    # Per-sample softmax over T*V (f32, numerically stable; exp/rcp on the EUP).
    q = q - jnp.max(q, axis=1, keepdims=True)
    e = jnp.exp(q)
    p = e * pl.reciprocal(jnp.sum(e, axis=1, keepdims=True), approx=True)  # (B, TV)

    # interaction[c, b] = <key[c, b, :], p[b, :]>  -> (ip, B)  (weighted lane reduction)
    inter = jnp.sum(key * p[None, :, :], axis=-1)

    # conv_c on the interaction, then sigmoid -> per-(channel, sample) attention.
    logits = jnp.dot(wc_ref[...], inter, preferred_element_type=jnp.float32)  # (pp, B)
    attn = pl.reciprocal(1.0 + jnp.exp(-logits), approx=True)                 # sigmoid via EUP

    attended = (value * attn[:, :, None]).reshape(pp, B * TV)                 # (pp, B*TV) f32

    # conv_down(concat([attended, x])) + folded BN, with NO concat copy:
    # the residual half was already produced by the stacked matmul above.
    # (attended lives only in VMEM/vregs, so keeping this dot in f32 costs no traffic.)
    out = (jnp.dot(wda_ref[...].astype(jnp.float32), attended,
                   preferred_element_type=jnp.float32)
           + resid + bd_ref[...])                                             # (Cin, B*TV)

    o_ref[...] = out.astype(o_ref.dtype)                  # single lane-dense store


# ----------------------------------------------------------------------------
# Deterministic parameter construction (shapes follow MFA.__init__)
# ----------------------------------------------------------------------------
def init_params(key, inplanes, planes):
    inter = planes // 2
    ks = jax.random.split(key, 5)

    def kaiming_fan_out(k, out_c, in_c):
        # kaiming_normal_(mode='fan_out') for a 1x1 conv: std = sqrt(2 / out_c)
        return (jax.random.normal(k, (out_c, in_c), jnp.float32)
                * np.sqrt(2.0 / out_c)).astype(jnp.float32)

    return {
        'inplanes': inplanes, 'planes': planes,
        'conv_v_w': kaiming_fan_out(ks[0], planes, inplanes),
        'conv_k_w': kaiming_fan_out(ks[1], inter, inplanes),
        'conv_q_w': kaiming_fan_out(ks[2], 1, inplanes),
        'conv_c_w': kaiming_fan_out(ks[3], planes, inter),
        'conv_down_w': kaiming_fan_out(ks[4], inplanes, planes + inplanes),
        # BatchNorm2d(inplanes), bn_init(bn, 1), eval mode (fresh running stats)
        'bn_gamma': jnp.ones((inplanes,), jnp.float32),
        'bn_beta': jnp.zeros((inplanes,), jnp.float32),
        'bn_mean': jnp.zeros((inplanes,), jnp.float32),
        'bn_var': jnp.ones((inplanes,), jnp.float32),
    }


# ----------------------------------------------------------------------------
# One-time weight preparation (fold BN, stack/pad, cast) — outside per-call path
# ----------------------------------------------------------------------------
def prepare_params(p):
    f32, bf16 = jnp.float32, jnp.bfloat16
    cin, planes = p['inplanes'], p['planes']
    inter = planes // 2
    pp = _round_up(planes, 8)     # sublane-aligned row blocks so in-kernel slices
    ip = _round_up(inter, 8)      # stay 8-aligned (no relayout copies)
    qb = 8
    cp = _round_up(cin, 8)

    # fold eval-mode BN into conv_down
    s = (p['bn_gamma'] / jnp.sqrt(p['bn_var'] + _EPS)).astype(f32)
    wd = p['conv_down_w'].astype(f32) * s[:, None]                        # (Cin, P+Cin)
    bd = (p['bn_beta'] - p['bn_mean'] * s).reshape(cin, 1).astype(f32)

    rows = pp + ip + qb + cp
    wstk = jnp.zeros((rows, cin), f32)
    wstk = wstk.at[0:planes].set(p['conv_v_w'].astype(f32))
    wstk = wstk.at[pp:pp + inter].set(p['conv_k_w'].astype(f32))
    wstk = wstk.at[pp + ip:pp + ip + 1].set(p['conv_q_w'].astype(f32))
    wstk = wstk.at[pp + ip + qb:pp + ip + qb + cin].set(wd[:, planes:])   # folded Wd_x

    wc = jnp.zeros((pp, ip), f32).at[:planes, :inter].set(p['conv_c_w'].astype(f32))
    wda = jnp.zeros((cin, pp), f32).at[:, :planes].set(wd[:, :planes])    # folded Wd_a

    return {
        'cin': cin, 'planes': planes, 'pp': pp, 'ip': ip, 'qb': qb,
        'wstk': wstk.astype(bf16),
        'wc': wc,                       # tiny (pp, ip); kept f32 for the f32 interaction
        'wda': wda.astype(bf16),
        'bd': bd,
    }


# ----------------------------------------------------------------------------
# Pallas-backed forward
# ----------------------------------------------------------------------------
def mfa_forward_pallas(x, prep, *, block_batch=8, io_dtype=jnp.bfloat16):
    """MFA.forward (stride=1, kernel_size=1 — the module defaults).  x: (N, Cin, T, V)."""
    # TODO(synk): stride > 1 (spatial subsampling in conv_v/k/q) is not implemented;
    #             the module default stride=1 is what is mapped here.
    N, cin, T, V = x.shape
    assert cin == prep['cin']
    TV = T * V

    # Batch-block the grid: B samples per step.  Keep the grid >= 2 steps for real N
    # so both TensorCores on v7x get work (no-op on v5e/v6e).
    B = max(1, min(block_batch, N))
    if (B * TV) % 128 != 0 and B != N:
        B = N                    # fall back to a single full-extent block (always legal)
    steps = -(-N // B)
    n_pad = steps * B

    # (N, Cin, T, V) -> (Cin, N_pad*TV): channels on sublanes, (sample, spatial) on lanes.
    xf = jnp.transpose(x.reshape(N, cin, TV), (1, 0, 2))                  # (Cin, N, TV)
    if n_pad != N:
        xf = jnp.pad(xf, ((0, 0), (0, n_pad - N), (0, 0)))                # zero samples, dropped
    xf = xf.reshape(cin, n_pad * TV).astype(io_dtype)

    kern = functools.partial(_mfa_kernel, pp=prep['pp'], ip=prep['ip'],
                             qb=prep['qb'], cin=cin, B=B, TV=TV)

    lane = B * TV

    def _rep(a):
        return pl.BlockSpec(a.shape, lambda i, _nd=a.ndim: (0,) * _nd)

    # VMEM per step here is tiny (tens of KiB); for production-size blocks re-derive B
    # for v7x's 64 MiB VMEM and set pltpu.CompilerParams(vmem_limit_bytes=...) explicitly.
    out = pl.pallas_call(
        kern,
        grid=(steps,),
        in_specs=[pl.BlockSpec((cin, lane), lambda i: (0, i)),
                  _rep(prep['wstk']), _rep(prep['wc']),
                  _rep(prep['wda']), _rep(prep['bd'])],
        out_specs=pl.BlockSpec((cin, lane), lambda i: (0, i)),
        out_shape=jax.ShapeDtypeStruct((cin, n_pad * TV), io_dtype),
        compiler_params=pltpu.CompilerParams(
            dimension_semantics=("parallel",)),      # batch blocks are independent
    )(xf, prep['wstk'], prep['wc'], prep['wda'], prep['bd'])

    out = out.reshape(cin, n_pad, TV)[:, :N]
    return jnp.transpose(out, (1, 0, 2)).reshape(N, cin, T, V)


# ----------------------------------------------------------------------------
# Pure-JAX reference (faithful translation of the PyTorch forward, eval-mode BN)
# ----------------------------------------------------------------------------
def mfa_forward_reference(x, p, cast_dtype=None):
    """If cast_dtype is given, x and conv weights are first rounded to it (so the
    reference is comparable to the bf16-I/O kernel); all math is f32."""
    def c(a):
        a = a.astype(jnp.float32)
        return a.astype(cast_dtype).astype(jnp.float32) if cast_dtype is not None else a

    N, cin, T, V = x.shape
    planes = p['planes']
    inter = planes // 2
    xr = c(x)

    value = jnp.einsum('nctv,oc->notv', xr, c(p['conv_v_w']), precision='highest')
    key = jnp.einsum('nctv,oc->notv', xr, c(p['conv_k_w']), precision='highest')
    query = jnp.einsum('nctv,oc->notv', xr, c(p['conv_q_w']), precision='highest')

    key = key.reshape(N, inter, T * V)
    query = query.reshape(N, 1, T * V)
    query = jax.nn.softmax(query, axis=2)

    interaction = jnp.einsum('nct,nqt->ncq', key, query, precision='highest')  # (N, inter, 1)
    interaction = interaction[..., None]                                       # (N, inter, 1, 1)
    interaction = jnp.einsum('nctv,oc->notv', interaction, c(p['conv_c_w']),
                             precision='highest')                              # (N, P, 1, 1)
    attention = jax.nn.sigmoid(interaction)
    attended = value * attention

    cat = jnp.concatenate([attended, xr], axis=1)
    out = jnp.einsum('nctv,oc->notv', cat, c(p['conv_down_w']), precision='highest')

    s = p['bn_gamma'] / jnp.sqrt(p['bn_var'] + _EPS)
    out = (out - p['bn_mean'][None, :, None, None]) * s[None, :, None, None] \
        + p['bn_beta'][None, :, None, None]
    return out


if __name__ == "__main__":
    key = jax.random.PRNGKey(0)
    kx, kp = jax.random.split(key)
    # N=8 with block_batch=4 -> grid of 2 steps, each processing 4 samples
    # (B*T*V = 1024 lane-dense blocks).
    N, inplanes, planes, T, V = 8, 4, 8, 16, 16
    params = init_params(kp, inplanes, planes)
    prep = prepare_params(params)
    x = jax.random.normal(kx, (N, inplanes, T, V), jnp.float32)

    out = mfa_forward_pallas(x, prep, block_batch=4)
    out = jax.block_until_ready(out)
    assert out.shape == (N, inplanes, T, V), out.shape

    # Compare against the reference computed from bf16-rounded inputs/weights; the
    # remaining difference is dominated by the final bf16 output rounding.
    ref = mfa_forward_reference(x, params, cast_dtype=jnp.bfloat16)
    err = float(jnp.max(jnp.abs(out.astype(jnp.float32) - ref)))
    assert err < 1e-1, f"max abs error too large: {err}"
    print("KERNEL_OK")
</pallas_src>

<mosaic_0001>
module attributes {stable_mosaic.version = 11 : i64} {
  func.func @_mfa_kernel(%arg0: i32, %arg1: memref<4x1024xbf16, #tpu.memory_space<vmem>>, %arg2: memref<32x4xbf16, #tpu.memory_space<vmem>>, %arg3: memref<8x8xf32, #tpu.memory_space<vmem>>, %arg4: memref<4x8xbf16, #tpu.memory_space<vmem>>, %arg5: memref<4x1xf32, #tpu.memory_space<vmem>>, %arg6: memref<4x1024xbf16, #tpu.memory_space<vmem>>) attributes {dimension_semantics = [#tpu.dimension_semantics<parallel>], iteration_bounds = array<i64: 2>, scalar_prefetch = 0 : i64, scratch_operands = 0 : i64, tpu.core_type = #tpu.core_type<tc>, window_params = [{transform_indices = @transform_0, window_bounds = array<i64: 4, 1024>}, {pipeline_mode = #tpu.pipeline_mode<synchronous>, transform_indices = @transform_1, window_bounds = array<i64: 32, 4>}, {pipeline_mode = #tpu.pipeline_mode<synchronous>, transform_indices = @transform_2, window_bounds = array<i64: 8, 8>}, {pipeline_mode = #tpu.pipeline_mode<synchronous>, transform_indices = @transform_3, window_bounds = array<i64: 4, 8>}, {pipeline_mode = #tpu.pipeline_mode<synchronous>, transform_indices = @transform_4, window_bounds = array<i64: 4, 1>}, {transform_indices = @transform_5, window_bounds = array<i64: 4, 1024>}]} {
    %c0 = arith.constant 0 : index
    %c0_0 = arith.constant 0 : index
    %0 = vector.load %arg1[%c0, %c0_0] : memref<4x1024xbf16, #tpu.memory_space<vmem>>, vector<4x1024xbf16>
    %c0_1 = arith.constant 0 : index
    %c0_2 = arith.constant 0 : index
    %1 = vector.load %arg2[%c0_1, %c0_2] : memref<32x4xbf16, #tpu.memory_space<vmem>>, vector<32x4xbf16>
    %cst = arith.constant dense<0.000000e+00> : vector<32x1024xf32>
    %2 = tpu.matmul %1, %0, %cst {dimension_numbers = #tpu.dot_dimension_numbers<[1], [0], [0], [1], [0, 0, 1, 1], [], []>} : vector<32x4xbf16>, vector<4x1024xbf16>, vector<32x1024xf32> -> vector<32x1024xf32>
    %3 = vector.extract_strided_slice %2 {offsets = [0, 0], sizes = [8, 1024], strides = [1, 1]} : vector<32x1024xf32> to vector<8x1024xf32>
    %4 = vector.shape_cast %3 : vector<8x1024xf32> to vector<8x4x256xf32>
    %5 = vector.extract_strided_slice %2 {offsets = [8, 0], sizes = [8, 1024], strides = [1, 1]} : vector<32x1024xf32> to vector<8x1024xf32>
    %6 = vector.shape_cast %5 : vector<8x1024xf32> to vector<8x4x256xf32>
    %7 = vector.extract_strided_slice %2 {offsets = [16, 0], sizes = [1, 1024], strides = [1, 1]} : vector<32x1024xf32> to vector<1x1024xf32>
    %8 = vector.shape_cast %7 : vector<1x1024xf32> to vector<4x256xf32>
    %9 = vector.extract_strided_slice %2 {offsets = [24, 0], sizes = [4, 1024], strides = [1, 1]} : vector<32x1024xf32> to vector<4x1024xf32>
    %cst_3 = arith.constant dense<0xFF800000> : vector<4xf32>
    %10 = vector.multi_reduction <maximumf>, %8, %cst_3 [1] : vector<4x256xf32> to vector<4xf32>
    %11 = vector.shape_cast %10 : vector<4xf32> to vector<4x1xf32>
    %12 = vector.broadcast %11 : vector<4x1xf32> to vector<4x256xf32>
    %13 = arith.subf %8, %12 : vector<4x256xf32>
    %14 = math.exp %13 : vector<4x256xf32>
    %cst_4 = arith.constant dense<0.000000e+00> : vector<4xf32>
    %15 = vector.multi_reduction <add>, %14, %cst_4 [1] : vector<4x256xf32> to vector<4xf32>
    %16 = vector.shape_cast %15 : vector<4xf32> to vector<4x1xf32>
    %17 = tpu.reciprocal %16 {approx = true} : vector<4x1xf32> -> vector<4x1xf32>
    %18 = vector.broadcast %17 : vector<4x1xf32> to vector<4x256xf32>
    %19 = arith.mulf %14, %18 : vector<4x256xf32>
    %20 = vector.shape_cast %19 : vector<4x256xf32> to vector<1x4x256xf32>
    %21 = vector.broadcast %20 : vector<1x4x256xf32> to vector<8x4x256xf32>
    %22 = arith.mulf %6, %21 : vector<8x4x256xf32>
    %cst_5 = arith.constant dense<0.000000e+00> : vector<8x4xf32>
    %23 = vector.multi_reduction <add>, %22, %cst_5 [2] : vector<8x4x256xf32> to vector<8x4xf32>
    %c0_6 = arith.constant 0 : index
    %c0_7 = arith.constant 0 : index
    %24 = vector.load %arg3[%c0_6, %c0_7] : memref<8x8xf32, #tpu.memory_space<vmem>>, vector<8x8xf32>
    %cst_8 = arith.constant dense<0.000000e+00> : vector<8x4xf32>
    %25 = tpu.matmul %24, %23, %cst_8 {dimension_numbers = #tpu.dot_dimension_numbers<[1], [0], [0], [1], [0, 0, 1, 1], [], []>} : vector<8x8xf32>, vector<8x4xf32>, vector<8x4xf32> -> vector<8x4xf32>
    %cst_9 = arith.constant 0.000000e+00 : f32
    %26 = vector.broadcast %cst_9 : f32 to vector<8x4xf32>
    %27 = arith.subf %26, %25 : vector<8x4xf32>
    %28 = math.exp %27 : vector<8x4xf32>
    %cst_10 = arith.constant 1.000000e+00 : f32
    %29 = vector.broadcast %cst_10 : f32 to vector<8x4xf32>
    %30 = arith.addf %29, %28 : vector<8x4xf32>
    %31 = tpu.reciprocal %30 {approx = true} : vector<8x4xf32> -> vector<8x4xf32>
    %32 = vector.shape_cast %31 : vector<8x4xf32> to vector<8x4x1xf32>
    %33 = vector.broadcast %32 : vector<8x4x1xf32> to vector<8x4x256xf32>
    %34 = arith.mulf %4, %33 : vector<8x4x256xf32>
    %35 = vector.shape_cast %34 : vector<8x4x256xf32> to vector<8x1024xf32>
    %c0_11 = arith.constant 0 : index
    %c0_12 = arith.constant 0 : index
    %36 = vector.load %arg4[%c0_11, %c0_12] : memref<4x8xbf16, #tpu.memory_space<vmem>>, vector<4x8xbf16>
    %37 = arith.extf %36 : vector<4x8xbf16> to vector<4x8xf32>
    %cst_13 = arith.constant dense<0.000000e+00> : vector<4x1024xf32>
    %38 = tpu.matmul %37, %35, %cst_13 {dimension_numbers = #tpu.dot_dimension_numbers<[1], [0], [0], [1], [0, 0, 1, 1], [], []>} : vector<4x8xf32>, vector<8x1024xf32>, vector<4x1024xf32> -> vector<4x1024xf32>
    %39 = arith.addf %38, %9 : vector<4x1024xf32>
    %c0_14 = arith.constant 0 : index
    %c0_15 = arith.constant 0 : index
    %40 = vector.load %arg5[%c0_14, %c0_15] : memref<4x1xf32, #tpu.memory_space<vmem>>, vector<4x1xf32>
    %41 = vector.broadcast %40 : vector<4x1xf32> to vector<4x1024xf32>
    %42 = arith.addf %39, %41 : vector<4x1024xf32>
    %43 = arith.truncf %42 : vector<4x1024xf32> to vector<4x1024xbf16>
    %c0_16 = arith.constant 0 : index
    %c0_17 = arith.constant 0 : index
    %44 = vector.load %arg6[%c0_16, %c0_17] : memref<4x1024xbf16, #tpu.memory_space<vmem>>, vector<4x1024xbf16>
    tpu.vector_store %arg6[%c0_16, %c0_17], %43 {strides = array<i32>} : memref<4x1024xbf16, #tpu.memory_space<vmem>>, vector<4x1024xbf16>,
    return
  }
  func.func @transform_0(%arg0: i32) -> (i32, i32) {
    %c0_i32 = arith.constant 0 : i32
    %c0_i32_0 = arith.constant 0 : i32
    return %c0_i32, %arg0 : i32, i32
  }
  func.func @transform_1(%arg0: i32) -> (i32, i32) {
    %c0_i32 = arith.constant 0 : i32
    %c0_i32_0 = arith.constant 0 : i32
    %c0_i32_1 = arith.constant 0 : i32
    return %c0_i32, %c0_i32_0 : i32, i32
  }
  func.func @transform_2(%arg0: i32) -> (i32, i32) {
    %c0_i32 = arith.constant 0 : i32
    %c0_i32_0 = arith.constant 0 : i32
    %c0_i32_1 = arith.constant 0 : i32
    return %c0_i32, %c0_i32_0 : i32, i32
  }
  func.func @transform_3(%arg0: i32) -> (i32, i32) {
    %c0_i32 = arith.constant 0 : i32
    %c0_i32_0 = arith.constant 0 : i32
    %c0_i32_1 = arith.constant 0 : i32
    return %c0_i32, %c0_i32_0 : i32, i32
  }
  func.func @transform_4(%arg0: i32) -> (i32, i32) {
    %c0_i32 = arith.constant 0 : i32
    %c0_i32_0 = arith.constant 0 : i32
    %c0_i32_1 = arith.constant 0 : i32
    return %c0_i32, %c0_i32_0 : i32, i32
  }
  func.func @transform_5(%arg0: i32) -> (i32, i32) {
    %c0_i32 = arith.constant 0 : i32
    %c0_i32_0 = arith.constant 0 : i32
    return %c0_i32, %arg0 : i32, i32
  }
}

</mosaic_0001>

<bundles_post_ra>
// kernel: tpu_custom_call.1
= control target key start
LH: loop header
LB: loop body
LE: loop exit
PB: predicated region body
PF: predicated region fallthrough
CT: control target
= control target key end

     0   :  { %10 = vsyncpa [#allocation3], 0  ;;  %s2644_s0 = inlined_call_operand.hbm [shape: bf16[4,2048], index: 0, kind: input, shape index: {}]   ;;  %s2645_s1 = inlined_call_operand.vmem [shape: bf16[32,4], index: 1, kind: input, shape index: {}]   ;;  %s2646_s2 = inlined_call_operand.vmem [shape: f32[8,8], index: 2, kind: input, shape index: {}]   ;;  %s2647_s3 = inlined_call_operand.vmem [shape: bf16[4,8], index: 3, kind: input, shape index: {}]   ;;  %s2648_s4 = inlined_call_operand.vmem [shape: f32[4,1], index: 4, kind: input, shape index: {}]   ;;  %s2649_s5 = inlined_call_operand.hbm [shape: bf16[4,2048], index: 5, kind: output, shape index: {}]  }
   0x1   :  { %12 = vsyncpa [#allocation3 + $0x1], 0 }
   0x2   :  { %13 = vsyncpa [#allocation4], 0 }
   0x3   :  { %15 = vsyncpa [#allocation4 + $0x1], 0  ;;  %s2185_s18 = smov 0   ;;  %s2187_s19 = smov 0  }
   0x4   :  { %s2189_s20 = smov 0   ;;  %s2191_s21 = smov 0  }
   0x5 LB: > { %s2206_s22 = sadd.s32 4294967295, %s2144_s21   ;;  %s1912_s23 = sadd.s32 4294967294, %s2144_s21   ;;  %s2144_s21 = sphi %s2191_s21, %s2664_s21   ;;  %s2140_s20 = sphi %s2189_s20, %s2663_s20   ;;  %s2136_s19 = sphi %s2187_s19, %s2662_s19   ;;  %s2132_s18 = sphi %s2185_s18, %s2661_s18  }
   0x6   : > { %s2210_s24 = sadd.s32 1, %s2144_s21   ;;  %s28_s25 = sadd.s32 1, %s2140_s20 }
   0x7   : > { %s25_s26 = ssub.s32 %s2144_s21, %s2210_s24  ;;  %p35_p0 = scmp.ne.s32.totalorder %s2140_s20, %s2136_s19 }
   0x8   : > { %p26_p1 = scmp.eq.s32.totalorder %s25_s26, 0  ;;  %p36_p2 = scmp.eq.s32.totalorder %s2144_s21, 0 }
   0x9   : > { %p41_p3 = scmp.ne.s32.totalorder %s2136_s19, %s2132_s18  ;;  %p42_p4 = scmp.eq.s32.totalorder %s2206_s22, 0 }
   0xa   : > { %s2222_s27 = scalar_select %p26_p1, %s2140_s20, %s28_s25  }
   0xb   : > { %p2224_p5 = por %p36_p2, %p35_p0  ;;  %p2228_p6 = por %p42_p4, %p41_p3 }
   0xc   : > { %p149_p7 = scmp.eq.s32.totalorder %s2206_s22, 1  ;;  %p155_p8 = scmp.eq.s32.totalorder %s1912_s23, 1 }
   0xd   : > { %p1994_p10 = scmp.lt.s32.totalorder %s2144_s21, 2  ;;  %s187_s7 = sand.u32 1, %s2140_s20  }
   0xe   : > { %p2235_p11 = por %p149_p7, %p35_p0  ;;  %p2239_p12 = por %p155_p8, %p41_p3 }
   0xf   : > { %s1973_s8 = sshll.u32 %s2144_s21, 8  ;;  %s1915_s9 = sshll.u32 %s187_s7, 4 }
  0x10   : > { %s2653_s30 = scalar_select %p2235_p11, 1, 0 }
  0x11   : > { %s2654_s6 = scalar_select %p2239_p12, 1, 0 }
  0x12   : > { %s2248_s12 = scalar_lea.hbm %s2644_s0, %s1973_s8  ;;  %s191_s13 = scalar_lea.vmem [#allocation2], %s1915_s9 }
  0x13   : > { %s199_s14 = sshll.u32 %s191_s13, 4  ;;  %p2252_p13 = pnand %p1994_p10, %p2224_p5  ;;  %s2256_s14 = int_to_ptr.vmem [resolvable:$true] %s199_s14 }
  0x14   : > { %s188_s16 = scalar_lea.sflag [#allocation3], %s187_s7  ;;  %s2048_s17 = scalar_lea.hbm %s2248_s12, 256 }
  0x15   : > { %p2049_p2 = scmp.ne.s32.totalorder %s2248_s12, %s2048_s17  ;;  %p2050_p3 = pneg %p2252_p13 }
  0x16   : > { %s2053_s26 = scalar_lea.hbm %s2644_s0, 512  ;;  %p2054_p5 = scmp.lt.u32.totalorder %s2248_s12, %s2644_s0 }
  0x17   : > { %p2051_p4 = pnand %p2050_p3, %p2049_p2  ;;  %p2055_p8 = scmp.lt.u32.totalorder %s2053_s26, %s2048_s17 }
  0x18   : > { %p2057_p9 = scmp.lt.u32.totalorder %s2048_s17, %s2248_s12 }
  0x19   : > { %p2052_p7 = pneg %p2051_p4  ;;  %p2056_p10 = por %p2055_p8, %p2054_p5 }
  0x1b   : > { %p2058_p0 = por %p2057_p9, %p2056_p10 }
  0x1d   : > { %p2059_p1 = pnand %p2058_p0, %p2052_p7 }
  0x1f   : > { %2062 = shalt.err (!%p2059_p1)
}
  0x20   : > { %s2063_s7 = scalar_lea.vmem %s2256_s14, 256  ;;  %s2146_s9 = smov [#allocation2]  }
  0x21   : > { %p2064_p2 = scmp.ne.s32.totalorder %s2256_s14, %s2063_s7  ;;  %s2068_s10 = sshll.u32 %s2146_s9, 4  ;;  %s2069_s10 = int_to_ptr.vmem [resolvable:$false] %s2068_s10 }
  0x22   : > { %s2070_s11 = scalar_lea.vmem %s2069_s10, 512  ;;  %p2071_p11 = scmp.lt.s32.totalorder %s2256_s14, %s2069_s10 }
  0x23   : > { %p2066_p4 = pnand %p2064_p2, %p2050_p3  ;;  %p2072_p5 = scmp.lt.s32.totalorder %s2070_s11, %s2063_s7 }
  0x25   : > { %p2067_p12 = pneg %p2066_p4  ;;  %p2073_p8 = por %p2072_p5, %p2071_p11 }
  0x27   : > { %p2074_p9 = pnand %p2073_p8, %p2067_p12 }
  0x29   : > { %2077 = shalt.err (!%p2074_p9)
}
  0x2a   : > { %1989 = dma.hbm_to_vmem [thread:$0]  (!%p2252_p13), %s2248_s12, 256, %s2256_s14, %s188_s16  }
  0x2b   : > { %p2656_p0 = scmp.lt.s32.totalorder %s2144_s21, 3  ;;  %p2657_p1 = scmp.ge.s32.totalorder %s2144_s21, 1 }
  0x2d   : > { %p205_p3 = pnand %p2657_p1, %p2656_p0 }
  0x2e   : > { %s2290_s13 = sand.u32 (!%p205_p3), 1, %s2136_s19  }
  0x2f   : > { %208 = sbr.rel (%p205_p3) target bundleno = 1447 (0x5a7), region = 40  ;;  %s1919_s17 = sshll.u32 (!%p205_p3), %s2290_s13, 4 }
  0x30   : > { %s211_s23 = scalar_lea.sflag (!%p205_p3), [#allocation3], %s2290_s13  ;;  %s214_s15 = scalar_lea.vmem (!%p205_p3), [#allocation2], %s1919_s17 }
  0x36   : > { %2123 = dma.done.wait (%p2228_p6), %s211_s23, 256  }
  0x37   : > { %2125 = vsyncadd (%p2228_p6), %s211_s23, 4294967040  ;;  %v266_v0 = vlaneseq  ;;  %v2147_v1 = vmov 1983009808   ;;  %v2148_v3 = vmov 0   ;;  %v244_v7 = vld [vmem:[%s214_s15] sm:$0xff]  ;;  %vm303_vm0 = vcmask 1041408  }
  0x38   : > { %v264_v2 = vunpack.c.l.s4 %v2147_v1  ;;  %360 = vmatprep.mubr.bf16.mxu0 %v2148_v3  ;;  %413 = vmatprep.mubr.bf16.mxu1 %v2148_v3  ;;  %v262_v9 = vcombine.high %v244_v7, %v244_v7  ;;  %v245_v10 = vld [vmem:[%s214_s15 + $0x8] sm:$0xff]  ;;  %v2037_v18 = vld [vmem:[%s2645_s1] sm:$0xff]   ;;  %vm296_vm1 = vcmask 31744   ;;  %v2149_v26 = vmov 1966171168   ;;  %s1974_s10 = sshll.u32 %s2206_s22, 8 }
  0x39   : > { %v2301_v4 = vshrl.u32 %v266_v0, 7  ;;  %2035 = vset.pattern.permute.xlu0 %v2148_v3  ;;  %v279_v15 = vcombine.high %v245_v10, %v245_v10  ;;  %v2038_v24 = vld [vmem:[%s2645_s1 + $0x8] sm:$0xff]   ;;  %v873_v27 = vunpack.c.l.s4 %v2149_v26  ;;  %v2150_v42 = vmov 1934713408   ;;  %s240_s11 = scalar_lea.vmem [#allocation5], %s1919_s17  ;;  %s2600_s12 = scalar_lea.hbm %s2649_s5, %s1974_s10 }
  0x3a   : > { %v265_v5 = vunpack.c.0.s8 %v264_v2  ;;  %v599_v43 = vunpack.c.l.s4 %v2150_v42  ;;  %vm928_vm2 = vcmask 1043456   ;;  %vm2153_vm3 = vmmov 0   ;;  %s1842_s23 = sshll.u32 %s240_s11, 4  ;;  %s1828_s22 = scalar_lea.sflag [#allocation4], %s2290_s13  ;;  %s2602_s23 = int_to_ptr.vmem [resolvable:$true] %s1842_s23 }
  0x3b   : > { %v874_v34 = vunpack.c.0.s8 %v873_v27  ;;  %vm1080_vm4 = vcmask 1041409   ;;  %vm1082_vm5 = vcmask 1042434   ;;  %vm1084_vm6 = vcmask 1043459   ;;  %s2078_s17 = scalar_lea.vmem %s2602_s23, 256  ;;  %p2658_p11 = scmp.ne.s32.totalorder %s2653_s30, 0 }
  0x3c   : > { %v2304_v6 = vsub.s32 %v265_v5, %v2301_v4  ;;  %v600_v51 = vunpack.c.0.s8 %v599_v43  ;;  %vm1086_vm7 = vcmask 1044484   ;;  %vm1088_vm8 = vcmask 1045509   ;;  %p2079_p6 = scmp.ne.s32.totalorder %s2602_s23, %s2078_s17  ;;  %s2154_s14 = smov [#allocation5]  }
  0x3d   : > { %v2337_v37 = vsub.s32 %v874_v34, %v2301_v4  ;;  %vm1090_vm9 = vcmask 1046534   ;;  %vm1092_vm10 = vcmask 1047559   ;;  %vm1095_vm11 = vcmask 64512   ;;  %s2082_s16 = sshll.u32 %s2154_s14, 4  ;;  %s2083_s16 = int_to_ptr.vmem [resolvable:$false] %s2082_s16 }
  0x3e   : > { %v269_v8 = vrot.slane %v244_v7, %v2304_v6  ;;  %v276_v13 = vrot.slane %v262_v9, %v2304_v6  ;;  %v286_v14 = vrot.slane %v245_v10, %v2304_v6  ;;  %v293_v20 = vrot.slane %v279_v15, %v2304_v6  ;;  %p2080_p12 = pnand %p2079_p6, %p2658_p11  ;;  %s2084_s25 = scalar_lea.vmem %s2083_s16, 512 }
  0x3f   : > { %v2353_v62 = vsub.s32 %v600_v51, %v2301_v4  ;;  %p2085_p7 = scmp.lt.s32.totalorder %s2602_s23, %s2083_s16  ;;  %p2086_p10 = scmp.lt.s32.totalorder %s2084_s25, %s2078_s17 }
  0x40   : > { %v277_v11 = vcombine.high %v269_v8, %v269_v8  ;;  %v305_v12 = vsel %vm303_vm0, %v269_v8, 0  ;;  %v278_v16 = vcombine.high %v276_v13, %v276_v13  ;;  %v311_v17 = vsel %vm303_vm0, %v276_v13, 0  ;;  %p2081_p13 = pneg %p2080_p12 }
  0x41   : > { %v294_v19 = vcombine.high %v286_v14, %v286_v14  ;;  %v317_v21 = vsel %vm303_vm0, %v286_v14, 0  ;;  %v295_v22 = vcombine.high %v293_v20, %v293_v20  ;;  %v323_v23 = vsel %vm303_vm0, %v293_v20, 0  ;;  %p2087_p2 = por %p2086_p10, %p2085_p7 }
  0x42   : > { %1923 = vmatprep.subr.msk.bf16.mxu0 %vm303_vm0, %v277_v11  ;;  %1926 = vmatprep.subr.msk.bf16.mxu1 %vm303_vm0, %v278_v16 }
  0x43   : > { %329 = vmatpush1.bf16.msra.mxu0 %v305_v12  ;;  %382 = vmatpush1.bf16.msra.mxu1 %v311_v17  ;;  %p2088_p4 = pnand %p2087_p2, %p2081_p13 }
  0x44   : > { %1929 = vmatprep.subr.msk.bf16.mxu0 %vm303_vm0, %v294_v19  ;;  %1932 = vmatprep.subr.msk.bf16.mxu1 %vm303_vm0, %v295_v22 }
  0x46   : > { %1924 = vmatmul.mubr.msk.bf16.vlgmr.msra.gmra.mrb[0].mxu0 %vm296_vm1, %v2037_v18  ;;  %1927 = vmatmul.mubr.msk.bf16.vlgmr.msra.gmra.mrb[0].mxu1 %vm296_vm1, %v2037_v18 }
  0x47   : > { %370 = vmatprep.mubr.bf16.mxu0 %v2148_v3  ;;  %435 = vmatpush1.bf16.msra.mxu0 %v317_v21 }
  0x48   : > { %423 = vmatprep.mubr.bf16.mxu1 %v2148_v3  ;;  %488 = vmatpush1.bf16.msra.mxu1 %v323_v23 }
  0x4e   : > { %1925 = vmatmul.mubr.msk.bf16.gmra.mrb[4].mxu0 %vm296_vm1, %v2038_v24  ;;  %1928 = vmatmul.mubr.msk.bf16.gmra.mrb[4].mxu1 %vm296_vm1, %v2038_v24 }
  0x4f   : > { %466 = vmatprep.mubr.bf16.mxu0 %v2148_v3  ;;  %519 = vmatprep.mubr.bf16.mxu1 %v2148_v3 }
  0x56   : > { %1930 = vmatmul.mubr.msk.bf16.vlgmr.msra.gmra.mrb[8].mxu0 %vm296_vm1, %v2037_v18  ;;  %1933 = vmatmul.mubr.msk.bf16.vlgmr.msra.gmra.mrb[8].mxu1 %vm296_vm1, %v2037_v18 }
  0x57   : > { %476 = vmatprep.mubr.bf16.mxu0 %v2148_v3  ;;  %529 = vmatprep.mubr.bf16.mxu1 %v2148_v3 }
  0x5e   : > { %1931 = vmatmul.mubr.msk.bf16.gmra.mrb[12].mxu0 %vm296_vm1, %v2038_v24  ;;  %1934 = vmatmul.mubr.msk.bf16.gmra.mrb[12].mxu1 %vm296_vm1, %v2038_v24 }
 0x119   : > { %v362_v25 = vpop.f32.mrb[0].mxu0  ;;  %v415_v30 = vpop.f32.mrb[0].mxu1 }
 0x11a   : > { %v364_v28 = vpop.f32.mrb[1].mxu0  ;;  %v417_v32 = vpop.f32.mrb[1].mxu1 }
 0x11b   : > { %v366_v29 = vpop.f32.mrb[2].mxu0  ;;  %v2332_v33 = vpop.f32.mrb[2].mxu1 }
 0x11c   : > { %v368_v31 = vpop.f32.mrb[3].mxu0  ;;  %v2334_v35 = vpop.f32.mrb[3].mxu1 }
 0x121   : > { %v372_v36 = vpop.f32.mrb[4].mxu0  ;;  %v425_v41 = vpop.f32.mrb[4].mxu1 }
 0x122   : > { %v374_v38 = vpop.f32.mrb[5].mxu0  ;;  %v427_v45 = vpop.f32.mrb[5].mxu1 }
 0x123   : > { %v868_v39 = vcombine.low %v372_v36, %v374_v38  ;;  %v2339_v40 = vpop.f32.mrb[6].mxu0  ;;  %v869_v47 = vcombine.low %v425_v41, %v427_v45  ;;  %v2344_v48 = vpop.f32.mrb[6].mxu1 }
 0x124   : > { %v2341_v44 = vpop.f32.mrb[7].mxu0  ;;  %v2346_v49 = vpop.f32.mrb[7].mxu1 }
 0x125   : > { %v878_v46 = vrot.slane %v868_v39, %v2337_v37  ;;  %v885_v50 = vrot.slane %v869_v47, %v2337_v37 }
 0x127   : > { %v900_v52 = vcombine.low %v878_v46, %v885_v50 }
 0x129   : > { %v468_v53 = vpop.f32.mrb[8].mxu0  ;;  %v2350_v57 = vrot.slane %v900_v52, %v2337_v37  ;;  %v521_v61 = vpop.f32.mrb[8].mxu1 }
 0x12a   : > { %v1935_v54 = vcombine.low %v362_v25, %v468_v53  ;;  %v1939_v55 = vcombine.high %v362_v25, %v468_v53  ;;  %v470_v56 = vpop.f32.mrb[9].mxu0  ;;  %v523_v7 = vpop.f32.mrb[9].mxu1  ;;  %v1937_v10 = vcombine.low %v415_v30, %v521_v61  ;;  %v1941_v11 = vcombine.high %v415_v30, %v521_v61 }
 0x12b   : > { %v1936_v58 = vcombine.low %v364_v28, %v470_v56  ;;  %v1940_v59 = vcombine.high %v364_v28, %v470_v56  ;;  %v472_v60 = vpop.f32.mrb[10].mxu0  ;;  %v525_v12 = vpop.f32.mrb[10].mxu1  ;;  %v1938_v20 = vcombine.low %v417_v32, %v523_v7  ;;  %v1942_v21 = vcombine.high %v417_v32, %v523_v7 }
 0x12c   : > { %v2356_v63 = vrot.slane %v1935_v54, %v2304_v6  ;;  %v2359_v1 = vrot.slane %v1939_v55, %v2304_v6  ;;  %v1943_v2 = vcombine.low %v366_v29, %v472_v60  ;;  %v1947_v3 = vcombine.high %v366_v29, %v472_v60  ;;  %v474_v5 = vpop.f32.mrb[11].mxu0  ;;  %v527_v17 = vpop.f32.mrb[11].mxu1 }
 0x12d   : > { %v579_v8 = vrot.slane %v1936_v58, %v2304_v6  ;;  %v2363_v9 = vrot.slane %v1940_v59, %v2304_v6  ;;  %v1944_v15 = vcombine.low %v368_v31, %v474_v5  ;;  %v1948_v16 = vcombine.high %v368_v31, %v474_v5 }
 0x12e   : > { %v732_v13 = vrot.slane %v1943_v2, %v2304_v6  ;;  %v800_v14 = vrot.slane %v1947_v3, %v2304_v6  ;;  %v588_v18 = vrot.slane %v1937_v10, %v2304_v6  ;;  %v2369_v19 = vrot.slane %v1941_v11, %v2304_v6 }
 0x12f   : > { %v739_v22 = vrot.slane %v1944_v15, %v2304_v6  ;;  %v807_v23 = vrot.slane %v1948_v16, %v2304_v6  ;;  %v1945_v24 = vcombine.low %v2332_v33, %v525_v12  ;;  %v1949_v25 = vcombine.high %v2332_v33, %v525_v12 }
 0x130   : > { %v596_v26 = vcombine.low %v2356_v63, %v588_v18  ;;  %v597_v27 = vcombine.high %v2356_v63, %v588_v18  ;;  %v664_v28 = vcombine.low %v2359_v1, %v2369_v19  ;;  %v665_v29 = vcombine.high %v2359_v1, %v2369_v19 }
 0x131   : > { %v478_v30 = vpop.f32.mrb[12].mxu0  ;;  %v595_v31 = vrot.slane %v1938_v20, %v2304_v6  ;;  %v663_v32 = vrot.slane %v1942_v21, %v2304_v6  ;;  %v748_v34 = vrot.slane %v1945_v24, %v2304_v6  ;;  %v816_v36 = vrot.slane %v1949_v25, %v2304_v6  ;;  %v531_v43 = vpop.f32.mrb[12].mxu1 }
 0x132   : > { %v480_v33 = vpop.f32.mrb[13].mxu0  ;;  %v1946_v38 = vcombine.low %v2334_v35, %v527_v17  ;;  %v1950_v39 = vcombine.high %v2334_v35, %v527_v17  ;;  %v2390_v45 = vrot.slane %v596_v26, %v2353_v62  ;;  %v533_v53 = vpop.f32.mrb[13].mxu1 }
 0x133   : > { %v870_v41 = vcombine.low %v478_v30, %v480_v33  ;;  %v2387_v42 = vpop.f32.mrb[14].mxu0  ;;  %v612_v46 = vcombine.low %v579_v8, %v595_v31  ;;  %v613_v47 = vcombine.high %v579_v8, %v595_v31  ;;  %v680_v50 = vcombine.low %v2363_v9, %v663_v32  ;;  %v2396_v58 = vpop.f32.mrb[14].mxu1 }
 0x134   : > { %v681_v51 = vcombine.high %v2363_v9, %v663_v32  ;;  %v2394_v52 = vpop.f32.mrb[15].mxu0  ;;  %v756_v54 = vcombine.low %v732_v13, %v748_v34  ;;  %v757_v55 = vcombine.high %v732_v13, %v748_v34  ;;  %v824_v56 = vcombine.low %v800_v14, %v816_v36  ;;  %v2401_v1 = vpop.f32.mrb[15].mxu1 }
 0x135   : > { %v825_v35 = vcombine.high %v800_v14, %v816_v36  ;;  %v755_v59 = vrot.slane %v1946_v38, %v2304_v6  ;;  %v823_v60 = vrot.slane %v1950_v39, %v2304_v6  ;;  %v892_v61 = vrot.slane %v870_v41, %v2337_v37 }
 0x136   : > { %v871_v63 = vcombine.low %v531_v43, %v533_v53  ;;  %v2404_v2 = vrot.slane %v757_v55, %v2353_v62  ;;  %v2407_v3 = vrot.slane %v824_v56, %v2353_v62  ;;  %v2413_v7 = vrot.slane %v756_v54, %v2353_v62 }
 0x137   : > { %v2410_v5 = vrot.slane %v825_v35, %v2353_v62  ;;  %v772_v8 = vcombine.low %v739_v22, %v755_v59  ;;  %v773_v9 = vcombine.high %v739_v22, %v755_v59  ;;  %v840_v10 = vcombine.low %v807_v23, %v823_v60 }
 0x138   : > { %v841_v11 = vcombine.high %v807_v23, %v823_v60  ;;  %v899_v12 = vrot.slane %v871_v63, %v2337_v37  ;;  %v2417_v13 = vrot.slane %v612_v46, %v2353_v62  ;;  %v2420_v14 = vrot.slane %v597_v27, %v2353_v62 }
 0x139   : > { %v2423_v15 = vrot.slane %v613_v47, %v2353_v62  ;;  %v787_v16 = vrot.slane %v773_v9, %v2353_v62  ;;  %v2427_v17 = vrot.slane %v840_v10, %v2353_v62  ;;  %v780_v19 = vrot.slane %v772_v8, %v2353_v62 }
 0x13a   : > { %v2430_v18 = vrot.slane %v841_v11, %v2353_v62  ;;  %v901_v20 = vcombine.low %v892_v61, %v899_v12  ;;  %v629_v21 = vcombine.high %v2390_v45, %v2417_v13  ;;  %v628_v22 = vcombine.low %v2390_v45, %v2417_v13 }
 0x13b   : > { %v630_v23 = vcombine.low %v2420_v14, %v2423_v15  ;;  %v790_v24 = vcombine.low %v2404_v2, %v787_v16  ;;  %v788_v25 = vcombine.low %v2413_v7, %v780_v19  ;;  %v856_v26 = vcombine.low %v2407_v3, %v2427_v17 }
 0x13c   : > { %v789_v27 = vcombine.high %v2413_v7, %v780_v19  ;;  %v915_v30 = vrot.slane %v901_v20, %v2337_v37  ;;  %v858_v31 = vcombine.low %v2410_v5, %v2430_v18  ;;  %v791_v32 = vcombine.high %v2404_v2, %v787_v16 }
 0x13d   : > { %v857_v34 = vcombine.high %v2407_v3, %v2427_v17  ;;  %v859_v36 = vcombine.high %v2410_v5, %v2430_v18  ;;  %v2453_v33 = vrot.slane %v664_v28, %v2353_v62  ;;  %v2456_v38 = vrot.slane %v680_v50, %v2353_v62 }
 0x13e   : > { %v631_v39 = vcombine.high %v2420_v14, %v2423_v15  ;;  %v916_v41 = vcombine.low %v2350_v57, %v915_v30  ;;  %v2462_v43 = vrot.slane %v665_v29, %v2353_v62  ;;  %v2465_v46 = vrot.slane %v681_v51, %v2353_v62 }
 0x13f   : > { %v696_v47 = vcombine.low %v2453_v33, %v2456_v38  ;;  %v697_v28 = vcombine.high %v2453_v33, %v2456_v38  ;;  %v2151_v56 = vmov 839922192   ;;  %v1470_v33 = vld [vmem:[%s2647_s3] sm:$0x3] }
 0x140   : > { %v924_v50 = vrot.slane %v916_v41, %v2337_v37  ;;  %v698_v53 = vcombine.low %v2462_v43, %v2465_v46  ;;  %v699_v57 = vcombine.high %v2462_v43, %v2465_v46  ;;  %v936_v35 = vunpack.c.l.s4 %v2151_v56 }
 0x142   : > { %v926_v29 = vcombine.high %v924_v50, %v924_v50  ;;  %v929_v54 = vsel %vm928_vm2, %v924_v50, -inf  ;;  %v937_v59 = vunpack.c.0.s8 %v936_v35 }
 0x144   : > { %v930_v51 = vsel %vm928_vm2, %v926_v29, -inf  ;;  %v2479_v60 = vsub.s32 %v937_v59, %v2301_v4 }
 0x145   : > { %v931_v55 = vmax.f32 %v929_v54, %v930_v51 }
 0x147   : > { %932 = vmax.xlane.f32.xlu0 %v931_v55 }
 0x1d4   : > { %v933_v37 = vpop.xlane.xlu0 %932 }
 0x1d5   : > { %v941_v61 = vrot.slane %v933_v37, %v2479_v60 }
 0x1d7   : > { %v943_v63 = vsub.f32 %v924_v50, %v941_v61 }
 0x1d9   : > { %v944_v2 = vmul.f32 1.442695, %v943_v63 }
 0x1db   : > { %2040 = vpow2.f32 %v944_v2 }
 0x1e5   : > { %v2041_v3 = vpop.eup %2040 }
 0x1e6   : > { %v947_v7 = vcombine.high %v2041_v3, %v2041_v3  ;;  %v949_v8 = vsel %vm928_vm2, %v2041_v3, 0.0 }
 0x1e8   : > { %v950_v9 = vsel %vm928_vm2, %v947_v7, 0.0 }
 0x1e9   : > { %v951_v10 = vadd.f32 %v950_v9, %v949_v8 }
 0x1eb   : > { %952 = vadd.xlane.f32.xlu0 %v951_v10 }
 0x278   : > { %v953_v11 = vpop.xlane.xlu0 %952 }
 0x279   : > { %2042 = vrcp.f32 %v953_v11 }
 0x283   : > { %v2043_v12 = vpop.eup %2042 }
 0x284   : > { %v962_v16 = vrot.slane %v2043_v12, %v2479_v60 }
 0x286   : > { %v964_v17 = vmul.f32 %v2041_v3, %v962_v16 }
 0x288   : > { %v967_v19 = vmul.f32 %v964_v17, %v790_v24  ;;  %v965_v20 = vmul.f32 %v964_v17, %v788_v25  ;;  %v969_v30 = vmul.f32 %v964_v17, %v856_v26  ;;  %v966_v41 = vmul.f32 %v964_v17, %v789_v27 }
 0x289   : > { %v971_v54 = vmul.f32 %v964_v17, %v858_v31  ;;  %v968_v51 = vmul.f32 %v964_v17, %v791_v32  ;;  %v970_v24 = vmul.f32 %v964_v17, %v857_v34  ;;  %v972_v34 = vmul.f32 %v964_v17, %v859_v36 }
 0x28a   : > { %v983_v50 = vcombine.high %v967_v19, %v967_v19  ;;  %v981_v29 = vcombine.high %v965_v20, %v965_v20  ;;  %v985_v55 = vcombine.high %v969_v30, %v969_v30  ;;  %v982_v56 = vcombine.high %v966_v41, %v966_v41 }
 0x28b   : > { %v1007_v35 = vsel %vm928_vm2, %v967_v19, 0.0  ;;  %v997_v37 = vsel %vm928_vm2, %v965_v20, 0.0  ;;  %v987_v27 = vcombine.high %v971_v54, %v971_v54  ;;  %v984_v31 = vcombine.high %v968_v51, %v968_v51 }
 0x28c   : > { %v1008_v59 = vsel %vm928_vm2, %v983_v50, 0.0  ;;  %v998_v61 = vsel %vm928_vm2, %v981_v29, 0.0  ;;  %v1018_v25 = vsel %vm928_vm2, %v985_v55, 0.0  ;;  %v1003_v26 = vsel %vm928_vm2, %v982_v56, 0.0 }
 0x28d   : > { %v1009_v63 = vadd.f32 %v1008_v59, %v1007_v35  ;;  %v999_v2 = vadd.f32 %v998_v61, %v997_v37  ;;  %v1017_v32 = vsel %vm928_vm2, %v969_v30, 0.0  ;;  %v1002_v3 = vsel %vm928_vm2, %v966_v41, 0.0 }
 0x28e   : > { %v1019_v7 = vadd.f32 %v1018_v25, %v1017_v32  ;;  %v1004_v8 = vadd.f32 %v1003_v26, %v1002_v3  ;;  %v1028_v9 = vsel %vm928_vm2, %v987_v27, 0.0  ;;  %v1013_v10 = vsel %vm928_vm2, %v984_v31, 0.0 }
 0x28f   : > { %1010 = vadd.xlane.f32.xlu0 %v1009_v63  ;;  %1000 = vadd.xlane.f32.xlu1 %v999_v2  ;;  %v986_v11 = vcombine.high %v970_v24, %v970_v24  ;;  %v1027_v12 = vsel %vm928_vm2, %v971_v54, 0.0  ;;  %v1012_v16 = vsel %vm928_vm2, %v968_v51, 0.0  ;;  %v988_v41 = vcombine.high %v972_v34, %v972_v34 }
 0x290   : > { %v1029_v19 = vadd.f32 %v1028_v9, %v1027_v12  ;;  %v1014_v20 = vadd.f32 %v1013_v10, %v1012_v16  ;;  %v1022_v50 = vsel %vm928_vm2, %v970_v24, 0.0  ;;  %v1032_v5 = vsel %vm928_vm2, %v972_v34, 0.0  ;;  %v1037_v12 = vld [vmem:[%s2646_s2] sm:$0xff] }
 0x291   : > { %v1023_v30 = vsel %vm928_vm2, %v986_v11, 0.0  ;;  %v1033_v55 = vsel %vm928_vm2, %v988_v41, 0.0  ;;  %v2152_v36 = vmov 0.0   ;;  %v1047_v17 = vand.u32 127, %v266_v0 }
 0x292   : > { %v1024_v29 = vadd.f32 %v1023_v30, %v1022_v50  ;;  %v1034_v18 = vadd.f32 %v1033_v55, %v1032_v5  ;;  %1977 = vmatprep.subr.mxu0 %v2152_v36  ;;  %1539 = vmatprep.mubr.f32.mxu1 %v2152_v36  ;;  %v1183_v55 = vsub.s32 1, %v2301_v4  ;;  %v1176_v5 = vsub.s32 0, %v2301_v4 }
 0x293   : > { %1020 = vadd.xlane.f32.xlu0 %v1019_v7  ;;  %1005 = vadd.xlane.f32.xlu1 %v1004_v8  ;;  %v1050_v51 = vsub.s32 %v1047_v17, %v2301_v4 }
 0x294   : > { %1979 = vmatprep.mubr.msk.f32.mxu0 %vm2153_vm3, %v2152_v36 }
 0x297   : > { %1030 = vadd.xlane.f32.xlu0 %v1029_v19  ;;  %1015 = vadd.xlane.f32.xlu1 %v1014_v20 }
 0x29b   : > { %1025 = vadd.xlane.f32.xlu1 %v1024_v29 }
 0x29f   : > { %1035 = vadd.xlane.f32.xlu1 %v1034_v18 }
 0x31c   : > { %v1001_v54 = vpop.xlane.xlu1 %1000  ;;  %v1011_v56 = vpop.xlane.xlu0 %1010 }
 0x31d   : > { %v1051_v59 = vrot.slane %v1001_v54, %v1050_v51  ;;  %v1059_v2 = vrot.slane %v1011_v56, %v1050_v51  ;;  %v1204_v56 = vsub.s32 4, %v2301_v4 }
 0x320   : > { %v1006_v35 = vpop.xlane.xlu1 %1005  ;;  %v1021_v61 = vpop.xlane.xlu0 %1020 }
 0x321   : > { %v1055_v37 = vrot.slane %v1006_v35, %v1050_v51  ;;  %v1067_v31 = vrot.slane %v1021_v61, %v1050_v51  ;;  %v1218_v61 = vsub.s32 6, %v2301_v4 }
 0x323   : > { %v1081_v63 = vsel %vm1080_vm4, %v1055_v37, %v1051_v59  ;;  %v1197_v37 = vsub.s32 3, %v2301_v4 }
 0x324   : > { %v1016_v24 = vpop.xlane.xlu1 %1015  ;;  %v1083_v26 = vsel %vm1082_vm5, %v1059_v2, %v1081_v63  ;;  %v1031_v32 = vpop.xlane.xlu0 %1030 }
 0x325   : > { %v1063_v25 = vrot.slane %v1016_v24, %v1050_v51  ;;  %v1075_v9 = vrot.slane %v1031_v32, %v1050_v51  ;;  %v1211_v24 = vsub.s32 5, %v2301_v4 }
 0x327   : > { %v1085_v27 = vsel %vm1084_vm6, %v1063_v25, %v1083_v26  ;;  %v1225_v26 = vsub.s32 7, %v2301_v4 }
 0x328   : > { %v1026_v0 = vpop.xlane.xlu1 %1025  ;;  %v1087_v7 = vsel %vm1086_vm7, %v1067_v31, %v1085_v27  ;;  %v1759_v31 = vld [vmem:[%s2648_s4] sm:$0xf] }
 0x329   : > { %v1071_v3 = vrot.slane %v1026_v0, %v1050_v51 }
 0x32b   : > { %v1089_v8 = vsel %vm1088_vm8, %v1071_v3, %v1087_v7 }
 0x32c   : > { %v1036_v10 = vpop.xlane.xlu1 %1035  ;;  %v1091_v34 = vsel %vm1090_vm9, %v1075_v9, %v1089_v8 }
 0x32d   : > { %v1079_v11 = vrot.slane %v1036_v10, %v1050_v51  ;;  %v1190_v51 = vsub.s32 2, %v2301_v4 }
 0x32f   : > { %v1093_v16 = vsel %vm1092_vm10, %v1079_v11, %v1091_v34 }
 0x330   : > { %1978 = vmatpush3.msra.mxu0 %v1093_v16 }
 0x331   : > { %1980 = vmatmul.mubr.msk.f32.vlgmr.msra.gmra.mrb[16].mxu0 %vm1095_vm11, %v1037_v12 }
 0x332   : > { %1610 = vmatprep.mubr.f32.mxu0 %v2152_v36 }
 0x404   : > { %v1165_v19 = vpop.f32.mrb[16].mxu0 }
 0x405   : > { %v1169_v20 = vsub.f32 0.0, %v1165_v19  ;;  %v1981_v30 = vpop.f32.mrb[17].mxu0 }
 0x407   : > { %v1170_v41 = vmul.f32 1.442695, %v1169_v20 }
 0x409   : > { %2044 = vpow2.f32 %v1170_v41 }
 0x413   : > { %v2045_v50 = vpop.eup %2044 }
 0x414   : > { %v1172_v29 = vadd.f32 1.0, %v2045_v50 }
 0x416   : > { %2046 = vrcp.f32 %v1172_v29 }
 0x420   : > { %v2047_v18 = vpop.eup %2046 }
 0x421   : > { %v1184_v17 = vrot.slane %v2047_v18, %v1183_v55  ;;  %v1177_v54 = vrot.slane %v2047_v18, %v1176_v5  ;;  %v1191_v35 = vrot.slane %v2047_v18, %v1190_v51  ;;  %v1205_v59 = vrot.slane %v2047_v18, %v1204_v56 }
 0x422   : > { %v1198_v63 = vrot.slane %v2047_v18, %v1197_v37  ;;  %v1219_v2 = vrot.slane %v2047_v18, %v1218_v61  ;;  %v1212_v25 = vrot.slane %v2047_v18, %v1211_v24  ;;  %v1226_v27 = vrot.slane %v2047_v18, %v1225_v26 }
 0x423   : > { %1186 = vbcast.lane.b32.xlu1 %v1184_v17, 256  ;;  %1179 = vbcast.lane.b32.xlu0 %v1177_v54, 256 }
 0x427   : > { %1193 = vbcast.lane.b32.xlu1 %v1191_v35, 256  ;;  %1207 = vbcast.lane.b32.xlu0 %v1205_v59, 256 }
 0x42b   : > { %1200 = vbcast.lane.b32.xlu1 %v1198_v63, 256  ;;  %1221 = vbcast.lane.b32.xlu0 %v1219_v2, 256 }
 0x42f   : > { %1214 = vbcast.lane.b32.xlu1 %v1212_v25, 256  ;;  %1762 = vperm.xlu0 %2035, %v1759_v31  }
 0x433   : > { %1228 = vbcast.lane.b32.xlu1 %v1226_v27, 256 }
 0x495   : > { %v1187_v0 = vpop.permute.xlu1 %1186  ;;  %v1180_v32 = vpop.permute.xlu0 %1179 }
 0x496   : > { %v1244_v3 = vrot.slane %v1180_v32, %v2479_v60  ;;  %v1251_v10 = vrot.slane %v1187_v0, %v2479_v60 }
 0x498   : > { %v1302_v4 = vmul.f32 %v1244_v3, %v628_v22  ;;  %v1303_v50 = vmul.f32 %v1251_v10, %v629_v21  ;;  %v1471_v3 = vunpack.c.l.bf16 %v1470_v33 }
 0x499   : > { %v1194_v7 = vpop.permute.xlu1 %1193  ;;  %v1208_v8 = vpop.permute.xlu0 %1207 }
 0x49a   : > { %v1258_v9 = vrot.slane %v1194_v7, %v2479_v60  ;;  %v1272_v34 = vrot.slane %v1208_v8, %v2479_v60 }
 0x49c   : > { %v1304_v11 = vmul.f32 %v1258_v9, %v630_v23  ;;  %v1306_v22 = vmul.f32 %v1272_v34, %v696_v47 }
 0x49d   : > { %v1201_v12 = vpop.permute.xlu1 %1200  ;;  %v1222_v16 = vpop.permute.xlu0 %1221 }
 0x49e   : > { %v1310_v19 = vcombine.low %v1302_v4, %v1304_v11  ;;  %v1311_v20 = vcombine.high %v1302_v4, %v1304_v11  ;;  %v1265_v30 = vrot.slane %v1201_v12, %v2479_v60  ;;  %v1286_v41 = vrot.slane %v1222_v16, %v2479_v60 }
 0x4a0   : > { %v1305_v23 = vmul.f32 %v1265_v30, %v631_v39  ;;  %v1308_v29 = vmul.f32 %v1286_v41, %v698_v53  ;;  %v1318_v45 = vrot.slane %v1310_v19, %v2304_v6  ;;  %v1325_v13 = vrot.slane %v1311_v20, %v2304_v6 }
 0x4a1   : > { %v1215_v55 = vpop.permute.xlu1 %1214 }
 0x4a2   : > { %v1326_v5 = vcombine.low %v1303_v50, %v1305_v23  ;;  %v1327_v18 = vcombine.high %v1303_v50, %v1305_v23  ;;  %v1378_v17 = vcombine.low %v1306_v22, %v1308_v29  ;;  %v1379_v54 = vcombine.high %v1306_v22, %v1308_v29 }
 0x4a3   : > { %v1279_v14 = vrot.slane %v1215_v55, %v2479_v60 }
 0x4a4   : > { %v1334_v21 = vrot.slane %v1326_v5, %v2304_v6  ;;  %v1341_v47 = vrot.slane %v1327_v18, %v2304_v6  ;;  %v1386_v2 = vrot.slane %v1378_v17, %v2304_v6  ;;  %v1393_v24 = vrot.slane %v1379_v54, %v2304_v6 }
 0x4a5   : > { %v1229_v15 = vpop.permute.xlu1 %1228  ;;  %v1307_v59 = vmul.f32 %v1279_v14, %v697_v28 }
 0x4a6   : > { %v1342_v39 = vcombine.low %v1318_v45, %v1334_v21  ;;  %v1343_v51 = vcombine.high %v1318_v45, %v1334_v21  ;;  %v1293_v53 = vrot.slane %v1229_v15, %v2479_v60  ;;  %v1358_v56 = vcombine.low %v1325_v13, %v1341_v47 }
 0x4a7   : > { %v1359_v35 = vcombine.high %v1325_v13, %v1341_v47 }
 0x4a8   : > { %v1309_v37 = vmul.f32 %v1293_v53, %v699_v57  ;;  %v1366_v43 = vrot.slane %v1358_v56, %v2353_v62  ;;  %v1350_v46 = vrot.slane %v1342_v39, %v2353_v62  ;;  %v1357_v8 = vrot.slane %v1343_v51, %v2353_v62 }
 0x4a9   : > { %v1373_v7 = vrot.slane %v1359_v35, %v2353_v62 }
 0x4aa   : > { %v1394_v61 = vcombine.low %v1307_v59, %v1309_v37  ;;  %v1395_v63 = vcombine.high %v1307_v59, %v1309_v37 }
 0x4ac   : > { %v1402_v25 = vrot.slane %v1394_v61, %v2304_v6  ;;  %v1409_v60 = vrot.slane %v1395_v63, %v2304_v6 }
 0x4ae   : > { %v1410_v26 = vcombine.low %v1386_v2, %v1402_v25  ;;  %v1411_v27 = vcombine.high %v1386_v2, %v1402_v25  ;;  %v1426_v31 = vcombine.low %v1393_v24, %v1409_v60  ;;  %v1427_v38 = vcombine.high %v1393_v24, %v1409_v60 }
 0x4b0   : > { %v1434_v28 = vrot.slane %v1426_v31, %v2353_v62  ;;  %v1418_v57 = vrot.slane %v1410_v26, %v2353_v62  ;;  %v1441_v0 = vrot.slane %v1427_v38, %v2353_v62  ;;  %v1425_v32 = vrot.slane %v1411_v27, %v2353_v62  ;;  %v1763_v62 = vpop.permute.xlu0 %1762 }
 0x4b2   : > { %v1953_v9 = vcombine.low %v1366_v43, %v1434_v28  ;;  %v1955_v10 = vcombine.high %v1366_v43, %v1434_v28  ;;  %v1952_v4 = vcombine.low %v1350_v46, %v1418_v57  ;;  %v1954_v11 = vcombine.high %v1350_v46, %v1418_v57 }
 0x4b3   : > { %v1957_v34 = vcombine.low %v1373_v7, %v1441_v0  ;;  %v1959_v12 = vcombine.high %v1373_v7, %v1441_v0  ;;  %v1956_v16 = vcombine.low %v1357_v8, %v1425_v32  ;;  %v1958_v19 = vcombine.high %v1357_v8, %v1425_v32 }
 0x4b4   : > { %1475 = vmatprep.subr.mxu1 %v1953_v9  ;;  %1546 = vmatprep.subr.mxu0 %v1955_v10 }
 0x4b5   : > { %1476 = vmatpush1.msra.mxu1 %v1952_v4  ;;  %1547 = vmatpush1.msra.mxu0 %v1954_v11 }
 0x4b6   : > { %1960 = vmatmul.mubr.msk.f32.vlgmr.msra.gmra.mrb[16].mxu1 %vm1095_vm11, %v1471_v3  ;;  %1961 = vmatmul.mubr.msk.f32.vlgmr.msra.gmra.mrb[18].mxu0 %vm1095_vm11, %v1471_v3 }
 0x4b7   : > { %1617 = vmatprep.subr.mxu1 %v1957_v34  ;;  %1688 = vmatprep.subr.mxu0 %v1959_v12 }
 0x4b8   : > { %1618 = vmatpush1.msra.mxu1 %v1956_v16  ;;  %1689 = vmatpush1.msra.mxu0 %v1958_v19 }
 0x4b9   : > { %1681 = vmatprep.mubr.f32.mxu1 %v2152_v36  ;;  %1752 = vmatprep.mubr.f32.mxu0 %v2152_v36 }
 0x4ba   : > { %1962 = vmatmul.mubr.msk.f32.vlgmr.msra.gmra.mrb[18].mxu1 %vm1095_vm11, %v1471_v3  ;;  %1963 = vmatmul.mubr.msk.f32.vlgmr.msra.gmra.mrb[20].mxu0 %vm1095_vm11, %v1471_v3 }
 0x589   : > { %v1541_v20 = vpop.f32.mrb[16].mxu1  ;;  %v1612_v30 = vpop.f32.mrb[18].mxu0 }
 0x58a   : > { %v1542_v41 = vadd.f32 %v1541_v20, %v2339_v40  ;;  %v1613_v50 = vadd.f32 %v1612_v30, %v2344_v48  ;;  %v1543_v22 = vpop.f32.mrb[17].mxu1  ;;  %v1614_v23 = vpop.f32.mrb[19].mxu0 }
 0x58b   : > { %v1544_v29 = vadd.f32 %v1543_v22, %v2341_v44  ;;  %v1615_v55 = vadd.f32 %v1614_v23, %v2346_v49 }
 0x58c   : > { %v1765_v5 = vadd.f32 %v1763_v62, %v1542_v41  ;;  %v1767_v18 = vadd.f32 %v1763_v62, %v1613_v50 }
 0x58d   : > { %v1766_v36 = vadd.f32 %v1763_v62, %v1544_v29  ;;  %v1768_v17 = vadd.f32 %v1763_v62, %v1615_v55  ;;  %v1683_v54 = vpop.f32.mrb[18].mxu1  ;;  %v1754_v45 = vpop.f32.mrb[20].mxu0 }
 0x58e   : > { %v1684_v13 = vadd.f32 %v1683_v54, %v2387_v42  ;;  %v1755_v21 = vadd.f32 %v1754_v45, %v2396_v58  ;;  %v1685_v40 = vpop.f32.mrb[19].mxu1  ;;  %v1756_v48 = vpop.f32.mrb[21].mxu0 }
 0x58f   : > { %v1686_v47 = vadd.f32 %v1685_v40, %v2394_v52  ;;  %v1757_v44 = vadd.f32 %v1756_v48, %v2401_v1  ;;  %v1964_v14 = vpack.c.bf16 %v1766_v36, %v1765_v5  ;;  %v1965_v49 = vpack.c.bf16 %v1768_v17, %v1767_v18 }
 0x590   : > { %v1769_v15 = vadd.f32 %v1763_v62, %v1684_v13  ;;  %v1771_v39 = vadd.f32 %v1763_v62, %v1755_v21 }
 0x591   : > { %v1770_v51 = vadd.f32 %v1763_v62, %v1686_v47  ;;  %v1772_v53 = vadd.f32 %v1763_v62, %v1757_v44  ;;  %v1797_v56 = vrot.slane %v1964_v14, %v2304_v6  ;;  %v1804_v42 = vrot.slane %v1965_v49, %v2304_v6 }
 0x593   : > { %v1966_v58 = vpack.c.bf16 %v1770_v51, %v1769_v15  ;;  %v1967_v35 = vpack.c.bf16 %v1772_v53, %v1771_v39  ;;  %v1805_v59 = vcombine.low %v1797_v56, %v1804_v42 }
 0x595   : > { %v1814_v52 = vrot.slane %v1966_v58, %v2304_v6  ;;  %v1821_v1 = vrot.slane %v1967_v35, %v2304_v6  ;;  %1825 = vst [vmem:[%s240_s11] sm:$0xff] %v1805_v59 }
 0x597   : > { %v1822_v37 = vcombine.low %v1814_v52, %v1821_v1 }
 0x599   : > { %1826 = vst [vmem:[%s240_s11 + $0x8] sm:$0xff] %v1822_v37 }
 0x59a   : > { %2091 = shalt.err (!%p2088_p4)
}
 0x59b   : > { %s2092_s13 = scalar_lea.hbm %s2600_s12, 256  ;;  %s2096_s8 = scalar_lea.hbm %s2649_s5, 512 }
 0x59c   : > { %p2093_p5 = scmp.ne.s32.totalorder %s2600_s12, %s2092_s13  ;;  %p2097_p0 = scmp.lt.u32.totalorder %s2600_s12, %s2649_s5 }
 0x59d   : > { %p2098_p1 = scmp.lt.u32.totalorder %s2096_s8, %s2092_s13  ;;  %p2100_p6 = scmp.lt.u32.totalorder %s2092_s13, %s2600_s12 }
 0x59e   : > { %p2094_p8 = pnand %p2093_p5, %p2658_p11 }
 0x59f   : > { %p2099_p3 = por %p2098_p1, %p2097_p0 }
 0x5a0   : > { %p2095_p9 = pneg %p2094_p8 }
 0x5a1   : > { %p2101_p12 = por %p2100_p6, %p2099_p3 }
 0x5a3   : > { %p2102_p13 = pnand %p2101_p12, %p2095_p9 }
 0x5a5   : > { %2105 = shalt.err (!%p2102_p13)
}
 0x5a6   : > { %1984 = dma.vmem_to_hbm [thread:$0]  (%p2658_p11), %s2602_s23, 256, %s2600_s12, %s1828_s22  }
 0x5a7 PF: > { %s1854_s10 = sand.u32 1, %s2132_s18   ;;  %p2659_p7 = scmp.ne.s32.totalorder %s2654_s6, 0 }
 0x5a8   : > { %p2660_p10 = scmp.ge.s32.totalorder %s2144_s21, 2  ;;  %s1855_s11 = scalar_lea.sflag [#allocation4], %s1854_s10 }
 0x5aa   : > { %p1991_p2 = pnand %p2660_p10, %p2659_p7 }
 0x5ac   : > { %2127 = dma.done.wait (!%p1991_p2), %s1855_s11, 256  }
 0x5ad   : > { %2129 = vsyncadd (!%p1991_p2), %s1855_s11, 4294967040  ;;  %p18_p4 = scmp.ge.s32.totalorder %s2210_s24, 4   ;;  %s2661_s18 = smov %s2136_s19 }
 0x5ae   : > { %s2662_s19 = smov %s2140_s20  ;;  %s2663_s20 = smov %s2222_s27 }
 0x5af   : > { %s2664_s21 = smov %s2210_s24  ;;  %20 = sbr.rel (!%p18_p4) target bundleno = 5 (0x5), region = 85 }
 0x5b6   :  { %1860 = vsyncpa [#allocation3], 1 }
 0x5b7   :  { %1862 = vsyncpa [#allocation3 + $0x1], 1 }
 0x5b8   :  { %1863 = vsyncpa [#allocation4], 1 }
 0x5b9   :  { %1865 = vsyncpa [#allocation4 + $0x1], 1 }

</bundles_post_ra>
